<compile_context>
chip_gen: v6e
topology: v6e:2x2x1
jax: 0.10.0
libtpu: 0.0.40
codegen_flags: <defaults>
</compile_context>

<pallas_src>
import jax
import jax.numpy as jnp
from jax.experimental import pallas as pl
from jax.experimental.pallas import tpu as pltpu


def _round_up(x: int, m: int) -> int:
    return ((x + m - 1) // m) * m


def gcn_kernel(n_ref, x_ref, w1_ref, b1_ref, w2_ref, b2_ref, o_ref, acc_ref):
    # n_ref:  [1] int32 SMEM      true node count N (scalar prefetch)
    # x_ref:  [TB, tn, in]        one (graph-block, node-tile) of the batch
    # w1_ref: [in, hid]  b1_ref: [1, hid]   (f32)
    # w2_ref: [hid, out] b2_ref: [1, out]   (f32)
    # o_ref:  [TB, out]           per-graph outputs, written on last node tile
    # acc_ref:[TB, hid]  f32      running per-graph sum of relu(fc1(x))
    k = pl.program_id(1)
    tb, tn, in_f = x_ref.shape
    hidden = w1_ref.shape[1]

    @pl.when(k == 0)
    def _():
        acc_ref[...] = jnp.zeros_like(acc_ref)

    # One big MXU matmul for all TB graphs x tn nodes of this tile
    # (f32 accumulate; bias add + ReLU on the VPU in f32).
    x = x_ref[...].reshape(tb * tn, in_f)
    h = jnp.dot(x, w1_ref[...], preferred_element_type=jnp.float32)
    h = jnp.maximum(h + b1_ref[...], 0.0)                       # [TB*tn, hid] f32

    # Per-graph partial sum over this node tile (mean hoisted ahead of fc2,
    # which is exact because fc2 is affine).
    acc_ref[...] += jnp.sum(h.reshape(tb, tn, hidden), axis=1)  # [TB, hid]

    @pl.when(k == pl.num_programs(1) - 1)
    def _():
        n = n_ref[0]
        n_pad = pl.num_programs(1) * tn
        # Zero-padded node rows each contributed relu(0 @ W1 + b1) = relu(b1);
        # remove them once here instead of masking every tile.
        pad_rows = (n_pad - n).astype(jnp.float32)
        relu_b1 = jnp.maximum(b1_ref[...], 0.0)                 # [1, hid]
        h_bar = (acc_ref[...] - pad_rows * relu_b1) / n.astype(jnp.float32)
        # Single fc2 matmul for the whole graph block.
        y = jnp.dot(h_bar, w2_ref[...], preferred_element_type=jnp.float32)
        o_ref[...] = (y + b2_ref[...]).astype(o_ref.dtype)


def _choose_tiles(B, N, in_feats, x_itemsize, tile_n, tile_b):
    """Pick (TB, tn) so the double-buffered x tile stays well inside VMEM.

    Budget is conservative enough for v7x (64 MiB physical / 32 MiB scoped
    default) while still taking whole graphs per step at small feature widths.
    """
    budget = 12 * 1024 * 1024  # bytes for the double-buffered x tile
    row_align = 8 if x_itemsize >= 4 else 16  # sublane packing (f32 vs bf16)

    tn_full = _round_up(N, row_align)
    tn = tn_full if tile_n is None else _round_up(min(tile_n, tn_full), row_align)
    tn = min(tn, 2048)

    tb_full = _round_up(B, 8)
    tb = min(tb_full, 64) if tile_b is None else _round_up(min(tile_b, tb_full), 8)

    def x_bytes(tb_, tn_):
        return 2 * tb_ * tn_ * in_feats * x_itemsize  # double-buffered

    while x_bytes(tb, tn) > budget and tn > row_align:
        tn = _round_up(tn // 2, row_align)
    while x_bytes(tb, tn) > budget and tb > 8:
        tb = _round_up(tb // 2, 8)
    return tb, tn


def simple_gcn_forward_batched(node_feats, w1, b1, w2, b2, *,
                               x_dtype=None, tile_n=None, tile_b=None):
    """node_feats: [B, N, in_feats]; returns [B, out_feats] f32 (mean over nodes).

    If `x_dtype` is e.g. jnp.bfloat16, node_feats and w1 are cast to it (halves
    HBM traffic / doubles MXU rate); accumulation and fc2 remain f32.
    """
    B, N, in_feats = node_feats.shape
    hidden = w1.shape[1]
    out_feats = w2.shape[1]
    b1 = jnp.asarray(b1, jnp.float32).reshape(1, hidden)
    b2 = jnp.asarray(b2, jnp.float32).reshape(1, out_feats)
    w2 = jnp.asarray(w2, jnp.float32)

    if x_dtype is not None:
        node_feats = node_feats.astype(x_dtype)
        w1 = w1.astype(x_dtype)
    x_itemsize = jnp.dtype(node_feats.dtype).itemsize

    tb, tn = _choose_tiles(B, N, in_feats, x_itemsize, tile_n, tile_b)

    n_pad = _round_up(N, tn)
    b_pad = _round_up(B, tb)
    if n_pad != N or b_pad != B:
        node_feats = jnp.pad(node_feats, ((0, b_pad - B), (0, n_pad - N), (0, 0)))
    kt = n_pad // tn
    bt = b_pad // tb

    n_nodes = jnp.array([N], dtype=jnp.int32)  # scalar prefetch: true node count

    out = pl.pallas_call(
        gcn_kernel,
        out_shape=jax.ShapeDtypeStruct((b_pad, out_feats), jnp.float32),
        grid_spec=pltpu.PrefetchScalarGridSpec(
            num_scalar_prefetch=1,
            grid=(bt, kt),
            in_specs=[
                # Only x is tiled over (graph-block, node-tile); weights/biases
                # keep constant block indices -> VMEM-resident across the grid.
                pl.BlockSpec((tb, tn, in_feats), lambda b, k, n: (b, k, 0)),
                pl.BlockSpec((in_feats, hidden), lambda b, k, n: (0, 0)),
                pl.BlockSpec((1, hidden), lambda b, k, n: (0, 0)),
                pl.BlockSpec((hidden, out_feats), lambda b, k, n: (0, 0)),
                pl.BlockSpec((1, out_feats), lambda b, k, n: (0, 0)),
            ],
            out_specs=pl.BlockSpec((tb, out_feats), lambda b, k, n: (b, 0)),
            scratch_shapes=[pltpu.VMEM((tb, hidden), jnp.float32)],
        ),
        compiler_params=pltpu.CompilerParams(
            # graph-block axis parallel (megacore / v7x 2-TC), node reduction
            # axis arbitrary (resident accumulator).
            dimension_semantics=("parallel", "arbitrary"),
            # Covers v5e's 16 MiB scoped default; <= safe scoped VMEM on v6e/v7x.
            vmem_limit_bytes=32 * 1024 * 1024,
        ),
    )(n_nodes, node_feats, w1, b1, w2, b2)
    return out[:B]


def simple_gcn_forward(node_feats, w1, b1, w2, b2, edges=None, *,
                       x_dtype=None, tile_n=None, tile_b=None):
    """Single-graph API matching the PyTorch forward: [N, in] -> [out_feats].

    `edges` is accepted for parity with SimpleGCN.forward but unused there too.
    """
    out = simple_gcn_forward_batched(node_feats[None], w1, b1, w2, b2,
                                     x_dtype=x_dtype, tile_n=tile_n, tile_b=tile_b)
    return out[0]


def init_params(key, in_feats, hidden_feats, out_feats):
    """Deterministic init mimicking nn.Linear default (uniform +/- 1/sqrt(fan_in))."""
    k1, k2, k3, k4 = jax.random.split(key, 4)
    lim1 = 1.0 / jnp.sqrt(in_feats)
    lim2 = 1.0 / jnp.sqrt(hidden_feats)
    w1 = jax.random.uniform(k1, (in_feats, hidden_feats), jnp.float32, -lim1, lim1)
    b1 = jax.random.uniform(k2, (1, hidden_feats), jnp.float32, -lim1, lim1)
    w2 = jax.random.uniform(k3, (hidden_feats, out_feats), jnp.float32, -lim2, lim2)
    b2 = jax.random.uniform(k4, (1, out_feats), jnp.float32, -lim2, lim2)
    return w1, b1, w2, b2


if __name__ == "__main__":
    key = jax.random.PRNGKey(0)
    N, IN_FEATS, HIDDEN, OUT_FEATS = 8, 16, 32, 8

    k_x, k_p, k_b = jax.random.split(key, 3)
    node_feats = jax.random.normal(k_x, (N, IN_FEATS), jnp.float32)
    w1, b1, w2, b2 = init_params(k_p, IN_FEATS, HIDDEN, OUT_FEATS)

    # --- single-graph path (matches torch.mean(fc2(relu(fc1(x))), dim=0)) ---
    out = simple_gcn_forward(node_feats, w1, b1, w2, b2)
    out = jax.block_until_ready(out)
    ref = jnp.mean(jnp.maximum(node_feats @ w1 + b1, 0.0) @ w2 + b2, axis=0)
    assert out.shape == (OUT_FEATS,)
    assert jnp.allclose(out, ref, atol=1e-4, rtol=1e-4)

    # --- batched path: B not a multiple of the graph block, N not a multiple
    #     of the node tile (exercises batch padding, multi-step node reduction
    #     and the padded-row correction) ---
    B, N2 = 5, 20
    xb = jax.random.normal(k_b, (B, N2, IN_FEATS), jnp.float32)
    refb = (
        jnp.mean(jnp.maximum(jnp.einsum("bni,ih->bnh", xb, w1) + b1, 0.0), axis=1)
        @ w2
        + b2
    )

    outb = simple_gcn_forward_batched(xb, w1, b1, w2, b2, tile_n=8, tile_b=8)
    outb = jax.block_until_ready(outb)
    assert outb.shape == (B, OUT_FEATS)
    assert jnp.allclose(outb, refb, atol=1e-4, rtol=1e-4)

    # --- bf16 input path (x and w1 in bf16, f32 accumulation) ---
    outb16 = simple_gcn_forward_batched(xb, w1, b1, w2, b2,
                                        x_dtype=jnp.bfloat16, tile_n=8, tile_b=8)
    outb16 = jax.block_until_ready(outb16)
    assert outb16.shape == (B, OUT_FEATS)
    assert jnp.allclose(outb16, refb, atol=5e-2, rtol=5e-2)

    print("KERNEL_OK")
</pallas_src>

<mosaic_0001>
module attributes {stable_mosaic.version = 11 : i64} {
  func.func @gcn_kernel(%arg0: i32, %arg1: i32, %arg2: memref<1xi32, #tpu.memory_space<smem>>, %arg3: memref<8x8x16xf32, #tpu.memory_space<vmem>>, %arg4: memref<16x32xf32, #tpu.memory_space<vmem>>, %arg5: memref<1x32xf32, #tpu.memory_space<vmem>>, %arg6: memref<32x8xf32, #tpu.memory_space<vmem>>, %arg7: memref<1x8xf32, #tpu.memory_space<vmem>>, %arg8: memref<8x8xf32, #tpu.memory_space<vmem>>, %arg9: memref<8x32xf32, #tpu.memory_space<vmem>>) attributes {dimension_semantics = [#tpu.dimension_semantics<parallel>, #tpu.dimension_semantics<arbitrary>], iteration_bounds = array<i64: 1, 1>, scalar_prefetch = 1 : i64, scratch_operands = 1 : i64, tpu.core_type = #tpu.core_type<tc>, window_params = [{transform_indices = @transform_0, window_bounds = array<i64: 8, 8, 16>}, {pipeline_mode = #tpu.pipeline_mode<synchronous>, transform_indices = @transform_1, window_bounds = array<i64: 16, 32>}, {pipeline_mode = #tpu.pipeline_mode<synchronous>, transform_indices = @transform_2, window_bounds = array<i64: 1, 32>}, {pipeline_mode = #tpu.pipeline_mode<synchronous>, transform_indices = @transform_3, window_bounds = array<i64: 32, 8>}, {pipeline_mode = #tpu.pipeline_mode<synchronous>, transform_indices = @transform_4, window_bounds = array<i64: 1, 8>}, {transform_indices = @transform_5, window_bounds = array<i64: 8, 8>}]} {
    %c0_i32 = arith.constant 0 : i32
    %0 = arith.cmpi eq, %arg1, %c0_i32 : i32
    %1 = arith.extui %0 : i1 to i32
    %c0_i32_0 = arith.constant 0 : i32
    %2 = arith.cmpi ne, %1, %c0_i32_0 : i32
    scf.if %2 {
      %cst_15 = arith.constant 0.000000e+00 : f32
      %20 = vector.broadcast %cst_15 : f32 to vector<8x32xf32>
      %c0_16 = arith.constant 0 : index
      %c0_17 = arith.constant 0 : index
      %21 = vector.load %arg9[%c0_16, %c0_17] : memref<8x32xf32, #tpu.memory_space<vmem>>, vector<8x32xf32>
      tpu.vector_store %arg9[%c0_16, %c0_17], %20 {strides = array<i32>} : memref<8x32xf32, #tpu.memory_space<vmem>>, vector<8x32xf32>,
    } else {
    }
    %c0 = arith.constant 0 : index
    %c0_1 = arith.constant 0 : index
    %c0_2 = arith.constant 0 : index
    %3 = vector.load %arg3[%c0, %c0_1, %c0_2] : memref<8x8x16xf32, #tpu.memory_space<vmem>>, vector<8x8x16xf32>
    %4 = vector.shape_cast %3 : vector<8x8x16xf32> to vector<64x16xf32>
    %c0_3 = arith.constant 0 : index
    %c0_4 = arith.constant 0 : index
    %5 = vector.load %arg4[%c0_3, %c0_4] : memref<16x32xf32, #tpu.memory_space<vmem>>, vector<16x32xf32>
    %cst = arith.constant dense<0.000000e+00> : vector<64x32xf32>
    %6 = tpu.matmul %4, %5, %cst {dimension_numbers = #tpu.dot_dimension_numbers<[1], [0], [0], [1], [0, 0, 1, 1], [], []>} : vector<64x16xf32>, vector<16x32xf32>, vector<64x32xf32> -> vector<64x32xf32>
    %c0_5 = arith.constant 0 : index
    %c0_6 = arith.constant 0 : index
    %7 = vector.load %arg5[%c0_5, %c0_6] : memref<1x32xf32, #tpu.memory_space<vmem>>, vector<1x32xf32>
    %8 = vector.broadcast %7 : vector<1x32xf32> to vector<64x32xf32>
    %9 = arith.addf %6, %8 : vector<64x32xf32>
    %cst_7 = arith.constant 0.000000e+00 : f32
    %10 = vector.broadcast %cst_7 : f32 to vector<64x32xf32>
    %11 = arith.maximumf %9, %10 : vector<64x32xf32>
    %c0_8 = arith.constant 0 : index
    %c0_9 = arith.constant 0 : index
    %12 = vector.load %arg9[%c0_8, %c0_9] : memref<8x32xf32, #tpu.memory_space<vmem>>, vector<8x32xf32>
    %13 = vector.shape_cast %11 : vector<64x32xf32> to vector<8x8x32xf32>
    %cst_10 = arith.constant dense<0.000000e+00> : vector<8x32xf32>
    %14 = vector.multi_reduction <add>, %13, %cst_10 [1] : vector<8x8x32xf32> to vector<8x32xf32>
    %15 = arith.addf %12, %14 : vector<8x32xf32>
    %c0_11 = arith.constant 0 : index
    %c0_12 = arith.constant 0 : index
    %16 = vector.load %arg9[%c0_11, %c0_12] : memref<8x32xf32, #tpu.memory_space<vmem>>, vector<8x32xf32>
    tpu.vector_store %arg9[%c0_11, %c0_12], %15 {strides = array<i32>} : memref<8x32xf32, #tpu.memory_space<vmem>>, vector<8x32xf32>,
    %c0_i32_13 = arith.constant 0 : i32
    %17 = arith.cmpi eq, %arg1, %c0_i32_13 : i32
    %18 = arith.extui %17 : i1 to i32
    %c0_i32_14 = arith.constant 0 : i32
    %19 = arith.cmpi ne, %18, %c0_i32_14 : i32
    scf.if %19 {
      %c0_15 = arith.constant 0 : index
      %20 = memref.load %arg2[%c0_15] : memref<1xi32, #tpu.memory_space<smem>>
      %c8_i32 = arith.constant 8 : i32
      %21 = arith.subi %c8_i32, %20 : i32
      %22 = arith.sitofp %21 : i32 to f32
      %c0_16 = arith.constant 0 : index
      %c0_17 = arith.constant 0 : index
      %23 = vector.load %arg5[%c0_16, %c0_17] : memref<1x32xf32, #tpu.memory_space<vmem>>, vector<1x32xf32>
      %cst_18 = arith.constant 0.000000e+00 : f32
      %24 = vector.broadcast %cst_18 : f32 to vector<1x32xf32>
      %25 = arith.maximumf %23, %24 : vector<1x32xf32>
      %c0_19 = arith.constant 0 : index
      %c0_20 = arith.constant 0 : index
      %26 = vector.load %arg9[%c0_19, %c0_20] : memref<8x32xf32, #tpu.memory_space<vmem>>, vector<8x32xf32>
      %27 = vector.broadcast %22 : f32 to vector<1x32xf32>
      %28 = arith.mulf %27, %25 : vector<1x32xf32>
      %29 = vector.broadcast %28 : vector<1x32xf32> to vector<8x32xf32>
      %30 = arith.subf %26, %29 : vector<8x32xf32>
      %31 = arith.sitofp %20 : i32 to f32
      %32 = vector.broadcast %31 : f32 to vector<8x32xf32>
      %33 = arith.divf %30, %32 : vector<8x32xf32>
      %c0_21 = arith.constant 0 : index
      %c0_22 = arith.constant 0 : index
      %34 = vector.load %arg6[%c0_21, %c0_22] : memref<32x8xf32, #tpu.memory_space<vmem>>, vector<32x8xf32>
      %cst_23 = arith.constant dense<0.000000e+00> : vector<8x8xf32>
      %35 = tpu.matmul %33, %34, %cst_23 {dimension_numbers = #tpu.dot_dimension_numbers<[1], [0], [0], [1], [0, 0, 1, 1], [], []>} : vector<8x32xf32>, vector<32x8xf32>, vector<8x8xf32> -> vector<8x8xf32>
      %c0_24 = arith.constant 0 : index
      %c0_25 = arith.constant 0 : index
      %36 = vector.load %arg7[%c0_24, %c0_25] : memref<1x8xf32, #tpu.memory_space<vmem>>, vector<1x8xf32>
      %37 = vector.broadcast %36 : vector<1x8xf32> to vector<8x8xf32>
      %38 = arith.addf %35, %37 : vector<8x8xf32>
      %c0_26 = arith.constant 0 : index
      %c0_27 = arith.constant 0 : index
      %39 = vector.load %arg8[%c0_26, %c0_27] : memref<8x8xf32, #tpu.memory_space<vmem>>, vector<8x8xf32>
      tpu.vector_store %arg8[%c0_26, %c0_27], %38 {strides = array<i32>} : memref<8x8xf32, #tpu.memory_space<vmem>>, vector<8x8xf32>,
    } else {
    }
    return
  }
  func.func @transform_0(%arg0: i32, %arg1: i32, %arg2: memref<1xi32, #tpu.memory_space<smem>>) -> (i32, i32, i32) {
    %c0_i32 = arith.constant 0 : i32
    %c0_i32_0 = arith.constant 0 : i32
    return %arg0, %arg1, %c0_i32 : i32, i32, i32
  }
  func.func @transform_1(%arg0: i32, %arg1: i32, %arg2: memref<1xi32, #tpu.memory_space<smem>>) -> (i32, i32) {
    %c0_i32 = arith.constant 0 : i32
    %c0_i32_0 = arith.constant 0 : i32
    %c0_i32_1 = arith.constant 0 : i32
    return %c0_i32, %c0_i32_0 : i32, i32
  }
  func.func @transform_2(%arg0: i32, %arg1: i32, %arg2: memref<1xi32, #tpu.memory_space<smem>>) -> (i32, i32) {
    %c0_i32 = arith.constant 0 : i32
    %c0_i32_0 = arith.constant 0 : i32
    %c0_i32_1 = arith.constant 0 : i32
    return %c0_i32, %c0_i32_0 : i32, i32
  }
  func.func @transform_3(%arg0: i32, %arg1: i32, %arg2: memref<1xi32, #tpu.memory_space<smem>>) -> (i32, i32) {
    %c0_i32 = arith.constant 0 : i32
    %c0_i32_0 = arith.constant 0 : i32
    %c0_i32_1 = arith.constant 0 : i32
    return %c0_i32, %c0_i32_0 : i32, i32
  }
  func.func @transform_4(%arg0: i32, %arg1: i32, %arg2: memref<1xi32, #tpu.memory_space<smem>>) -> (i32, i32) {
    %c0_i32 = arith.constant 0 : i32
    %c0_i32_0 = arith.constant 0 : i32
    %c0_i32_1 = arith.constant 0 : i32
    return %c0_i32, %c0_i32_0 : i32, i32
  }
  func.func @transform_5(%arg0: i32, %arg1: i32, %arg2: memref<1xi32, #tpu.memory_space<smem>>) -> (i32, i32) {
    %c0_i32 = arith.constant 0 : i32
    %c0_i32_0 = arith.constant 0 : i32
    return %arg0, %c0_i32 : i32, i32
  }
}

</mosaic_0001>

<bundles_post_ra>
// kernel: tpu_custom_call.1
= control target key start
LH: loop header
LB: loop body
LE: loop exit
PB: predicated region body
PF: predicated region fallthrough
CT: control target
= control target key end

     0   :  { %12 = vsyncpa [#allocation6], 0  ;;  %s608_s0 = inlined_call_operand.<no memory space> [shape: s32[1], index: 0, kind: input, shape index: {}]   ;;  %s609_s1 = inlined_call_operand.hbm [shape: f32[8,8,16], index: 1, kind: input, shape index: {}]   ;;  %s610_s2 = inlined_call_operand.vmem [shape: f32[16,32], index: 2, kind: input, shape index: {}]   ;;  %s611_s3 = inlined_call_operand.vmem [shape: f32[1,32], index: 3, kind: input, shape index: {}]   ;;  %s612_s4 = inlined_call_operand.vmem [shape: f32[32,8], index: 4, kind: input, shape index: {}]   ;;  %s613_s5 = inlined_call_operand.vmem [shape: f32[1,8], index: 5, kind: input, shape index: {}]   ;;  %s614_s6 = inlined_call_operand.hbm [shape: f32[8,8], index: 6, kind: output, shape index: {}]  }
   0x1   :  { %13 = vsyncpa [#allocation7], 0  ;;  %s509_s21 = smov [#allocation5]  }
   0x2   :  { %s19_s22 = sshll.u32 %s509_s21, 4  ;;  %s20_s22 = int_to_ptr.vmem [resolvable:$true] %s19_s22 }
   0x3   :  { %s473_s23 = scalar_lea.vmem %s20_s22, 1024  ;;  %p478_p1 = scmp.lt.s32.totalorder %s20_s22, %s20_s22 }
   0x4   :  { %p474_p0 = scmp.ne.s32.totalorder %s20_s22, %s473_s23  ;;  %p479_p2 = scmp.lt.s32.totalorder %s473_s23, %s473_s23 }
   0x6   :  { %p480_p3 = por %p479_p2, %p478_p1 }
   0x8   :  { %p481_p4 = pnand %p480_p3, %p474_p0 }
   0xa   :  { %484 = shalt.err (!%p481_p4)
}
   0xb   :  { %s510_s24 = smov 128   ;;  %s511_s25 = smov 8  }
   0xc   :  { %25 = dma.hbm_to_vmem [thread:$0]  %s609_s1, 1024, %s20_s22, [#allocation6], %s510_s24, %s510_s24, %s511_s25  }
   0xd   :  { %505 = dma.done.wait [#allocation6], 1024  }
   0xe   :  { %506 = vsyncadd [#allocation6], 4294966272  ;;  %vm60_vm0 = vcmask 130048   ;;  %v52_v0 = vld [vmem:[%s610_s2 + $0x8] sm:$0xff]  ;;  %v51_v1 = vld [vmem:[%s610_s2] sm:$0xff]  ;;  %vm41_vm1 = vcmask 261120   ;;  %s299_s17 = scvt.s32.f32 %s608_s0 }
   0xf   :  { %v43_v2 = vld [vmem:[#allocation5] sm:$0xff]  ;;  %430 = vmatprep.subr.mxu0 %v52_v0  ;;  %v44_v3 = vld [vmem:[#allocation5 + $0x8] sm:$0xff]  ;;  %v45_v4 = vld [vmem:[#allocation5 + $0x10] sm:$0xff]  ;;  %v512_v10 = vmov 0.0   ;;  %vm513_vm2 = vmmov 0   ;;  %vm264_vm3 = vcmask 1041409  }
  0x10   :  { %434 = vmatprep.mubr.msk.f32.mxu0 %vm60_vm0, %v43_v2  ;;  %431 = vmatpush3.msra.mxu0 %v52_v0  ;;  %v46_v5 = vld [vmem:[#allocation5 + $0x18] sm:$0xff]  ;;  %v47_v6 = vld [vmem:[#allocation5 + $0x20] sm:$0xff]  ;;  %v48_v7 = vld [vmem:[#allocation5 + $0x28] sm:$0xff]  ;;  %42 = vst.msk [vmem:[#allocation2] sm:$0xff] %vm41_vm1, %v512_v10  ;;  %vm266_vm4 = vcmask 1042434   ;;  %vm268_vm5 = vcmask 1043459  }
  0x11   :  { %432 = vmatprep.subr.mxu0 %v51_v1  ;;  %v49_v8 = vld [vmem:[#allocation5 + $0x30] sm:$0xff]  ;;  %v50_v9 = vld [vmem:[#allocation5 + $0x38] sm:$0xff]  ;;  %446 = vmatprep.subr.mxu1 %v512_v10  ;;  %v305_v12 = vld [vmem:[%s612_s4 + $0x10] sm:$0xff]  ;;  %vm270_vm6 = vcmask 1044484   ;;  %s285_s20 = ssub.s32 8, %s608_s0  ;;  %vm272_vm7 = vcmask 1045509  }
  0x12   :  { %433 = vmatpush3.msra.mxu0 %v51_v1  ;;  %v306_v11 = vld [vmem:[%s612_s4 + $0x18] sm:$0xff]  ;;  %454 = vmatprep.mubr.msk.f32.mxu1 %vm513_vm2, %v512_v10  ;;  %v304_v13 = vld [vmem:[%s612_s4 + $0x8] sm:$0xff]  ;;  %v303_v14 = vld [vmem:[%s612_s4] sm:$0xff]  ;;  %vm274_vm8 = vcmask 1046534   ;;  %s286_s21 = scvt.s32.f32 %s285_s20  ;;  %vm276_vm9 = vcmask 1047559   ;;  %s514_s24 = smov [#allocation8]  }
  0x13   :  { %435 = vmatmul.mubr.msk.f32.vlgmr.msra.gmra.mxu0 %vm60_vm0, %v44_v3  ;;  %447 = vmatpush3.msra.mxu1 %v306_v11  ;;  %v404_v15 = vld [vmem:[%s611_s3] ss:$0 sm:$0xff]  ;;  %s395_s25 = sshll.u32 %s514_s24, 4  ;;  %vm387_vm10 = vcmask 64512   ;;  %s396_s25 = int_to_ptr.vmem [resolvable:$true] %s395_s25 }
  0x14   :  { %437 = vmatprep.mubr.msk.f32.mxu0 %vm60_vm0, %v45_v4  ;;  %448 = vmatprep.subr.mxu1 %v512_v10  ;;  %s485_s26 = scalar_lea.vmem %s396_s25, 128  ;;  %p490_p6 = scmp.lt.s32.totalorder %s396_s25, %s396_s25 }
  0x15   :  { %449 = vmatpush3.msra.mxu1 %v305_v12  ;;  %p486_p5 = scmp.ne.s32.totalorder %s396_s25, %s485_s26  ;;  %p491_p7 = scmp.lt.s32.totalorder %s485_s26, %s485_s26 }
  0x16   :  { %450 = vmatprep.subr.mxu1 %v512_v10 }
  0x17   :  { %438 = vmatmul.mubr.msk.f32.gmra.mxu0 %vm60_vm0, %v46_v5  ;;  %451 = vmatpush3.msra.mxu1 %v304_v13  ;;  %p492_p8 = por %p491_p7, %p490_p6 }
  0x18   :  { %440 = vmatprep.mubr.msk.f32.mxu0 %vm60_vm0, %v47_v6  ;;  %452 = vmatprep.subr.mxu1 %v512_v10 }
  0x19   :  { %453 = vmatpush3.msra.mxu1 %v303_v14  ;;  %p493_p9 = pnand %p492_p8, %p486_p5 }
  0x1b   :  { %441 = vmatmul.mubr.msk.f32.gmra.mxu0 %vm60_vm0, %v48_v7 }
  0x1c   :  { %443 = vmatprep.mubr.msk.f32.mxu0 %vm60_vm0, %v49_v8 }
  0x1f   :  { %444 = vmatmul.mubr.msk.f32.gmra.mxu0 %vm60_vm0, %v50_v9 }
  0xd3   :  { %v436_v16 = vpop.f32.mrf.mxu0 }
  0xd4   :  { %v157_v17 = vadd.f32 %v436_v16, %v404_v15 }
  0xd5   :  { %v151_v18 = vpop.f32.mrf.mxu0 }
  0xd6   :  { %v191_v19 = vmax.f32 %v157_v17, 0.0  ;;  %v152_v20 = vadd.f32 %v404_v15, %v151_v18 }
  0xd7   :  { %v439_v21 = vpop.f32.mrf.mxu0 }
  0xd8   :  { %v207_v22 = vsel %vm41_vm1, %v191_v19, 0.0  ;;  %v190_v23 = vmax.f32 %v152_v20, 0.0  ;;  %v167_v24 = vadd.f32 %v439_v21, %v404_v15 }
  0xd9   :  { %v208_v25 = vrot.slane %v207_v22, 4  ;;  %v161_v26 = vpop.f32.mrf.mxu0 }
  0xda   :  { %v200_v27 = vsel %vm41_vm1, %v190_v23, 0.0  ;;  %v193_v28 = vmax.f32 %v167_v24, 0.0  ;;  %v162_v29 = vadd.f32 %v404_v15, %v161_v26 }
  0xdb   :  { %v209_v30 = vadd.f32 %v208_v25, %v207_v22  ;;  %v201_v31 = vrot.slane %v200_v27, 4  ;;  %v442_v32 = vpop.f32.mrf.mxu0 }
  0xdc   :  { %v221_v33 = vsel %vm41_vm1, %v193_v28, 0.0  ;;  %v192_v34 = vmax.f32 %v162_v29, 0.0  ;;  %v177_v35 = vadd.f32 %v442_v32, %v404_v15 }
  0xdd   :  { %v210_v36 = vrot.slane %v209_v30, 2  ;;  %v202_v37 = vadd.f32 %v201_v31, %v200_v27  ;;  %v222_v38 = vrot.slane %v221_v33, 4  ;;  %v171_v39 = vpop.f32.mrf.mxu0  ;;  %v300_v31 = vstv %s299_s17 }
  0xde   :  { %v214_v40 = vsel %vm41_vm1, %v192_v34, 0.0  ;;  %v195_v41 = vmax.f32 %v177_v35, 0.0  ;;  %v172_v42 = vadd.f32 %v404_v15, %v171_v39  ;;  %v293_v34 = vlaneseq }
  0xdf   :  { %v211_v43 = vadd.f32 %v210_v36, %v209_v30  ;;  %v203_v44 = vrot.slane %v202_v37, 2  ;;  %v223_v45 = vadd.f32 %v222_v38, %v221_v33  ;;  %v215_v46 = vrot.slane %v214_v40, 4  ;;  %v445_v47 = vpop.f32.mrf.mxu0  ;;  %v287_v36 = vld [vmem:[%s611_s3] sm:$0x1] }
  0xe0   :  { %v235_v48 = vsel %vm41_vm1, %v195_v41, 0.0  ;;  %v194_v49 = vmax.f32 %v172_v42, 0.0  ;;  %v187_v50 = vadd.f32 %v445_v47, %v404_v15  ;;  %463 = vrcp.f32 %v300_v31 }
  0xe1   :  { %v204_v51 = vadd.f32 %v203_v44, %v202_v37  ;;  %v224_v52 = vrot.slane %v223_v45, 2  ;;  %v216_v53 = vadd.f32 %v215_v46, %v214_v40  ;;  %v181_v54 = vpop.f32.mrf.mxu0  ;;  %v236_v55 = vrot.slane %v235_v48, 4  ;;  %v198_v40 = vld [vmem:[#allocation2] sm:$0xff] }
  0xe2   :  { %v228_v56 = vsel %vm41_vm1, %v194_v49, 0.0  ;;  %v197_v57 = vmax.f32 %v187_v50, 0.0  ;;  %v182_v58 = vadd.f32 %v404_v15, %v181_v54  ;;  %v212_v59 = vrot.slane %v211_v43, 1  ;;  %v413_v54 = vld [vmem:[%s613_s5] ss:$0 sm:$0xff] }
  0xe3   :  { %v205_v60 = vrot.slane %v204_v51, 1  ;;  %v217_v61 = vrot.slane %v216_v53, 2  ;;  %v237_v62 = vadd.f32 %v236_v55, %v235_v48  ;;  %v229_v63 = vrot.slane %v228_v56, 4 }
  0xe4   :  { %v249_v0 = vsel %vm41_vm1, %v197_v57, 0.0  ;;  %v196_v1 = vmax.f32 %v182_v58, 0.0  ;;  %v225_v2 = vadd.f32 %v224_v52, %v223_v45  ;;  %v213_v11 = vadd.f32 %v212_v59, %v211_v43 }
  0xe5   :  { %v218_v3 = vadd.f32 %v217_v61, %v216_v53  ;;  %v250_v4 = vrot.slane %v249_v0, 4  ;;  %v238_v5 = vrot.slane %v237_v62, 2  ;;  %v230_v6 = vadd.f32 %v229_v63, %v228_v56 }
  0xe6   :  { %v242_v7 = vsel %vm41_vm1, %v196_v1, 0.0  ;;  %v206_v8 = vadd.f32 %v205_v60, %v204_v51  ;;  %v226_v14 = vrot.slane %v225_v2, 1  ;;  %v288_v42 = vmax.f32 %v287_v36, 0.0 }
  0xe7   :  { %v219_v9 = vrot.slane %v218_v3, 1  ;;  %v251_v10 = vadd.f32 %v250_v4, %v249_v0  ;;  %v231_v12 = vrot.slane %v230_v6, 2  ;;  %v243_v13 = vrot.slane %v242_v7, 4 }
  0xe8   :  { %v239_v16 = vadd.f32 %v238_v5, %v237_v62  ;;  %v265_v20 = vsel %vm264_vm3, %v213_v11, %v206_v8  ;;  %v227_v25 = vadd.f32 %v226_v14, %v225_v2  ;;  %v294_v43 = vshrl.u32 %v293_v34, 7 }
  0xe9   :  { %v220_v15 = vadd.f32 %v219_v9, %v218_v3  ;;  %v252_v17 = vrot.slane %v251_v10, 2  ;;  %v232_v18 = vadd.f32 %v231_v12, %v230_v6  ;;  %v244_v19 = vadd.f32 %v243_v13, %v242_v7 }
  0xea   :  { %v240_v26 = vrot.slane %v239_v16, 1  ;;  %v290_v45 = vstv %s286_s21  ;;  %v295_v48 = vsub.s32 0, %v294_v43 }
  0xeb   :  { %v253_v21 = vadd.f32 %v252_v17, %v251_v10  ;;  %v267_v22 = vsel %vm266_vm4, %v220_v15, %v265_v20  ;;  %v233_v23 = vrot.slane %v232_v18, 1  ;;  %v245_v24 = vrot.slane %v244_v19, 2 }
  0xec   :  { %v269_v29 = vsel %vm268_vm5, %v227_v25, %v267_v22  ;;  %v241_v35 = vadd.f32 %v240_v26, %v239_v16  ;;  %v291_v47 = vmul.f32 %v290_v45, %v288_v42 }
  0xed   :  { %v234_v27 = vadd.f32 %v233_v23, %v232_v18  ;;  %v246_v28 = vadd.f32 %v245_v24, %v244_v19  ;;  %v254_v30 = vrot.slane %v253_v21, 1  ;;  %v464_v50 = vpop.eup %463 }
  0xee   :  { %v296_v49 = vrot.slane %v291_v47, %v295_v48 }
  0xef   :  { %v271_v32 = vsel %vm270_vm6, %v234_v27, %v269_v29  ;;  %v247_v33 = vrot.slane %v246_v28, 1  ;;  %v255_v38 = vadd.f32 %v254_v30, %v253_v21 }
  0xf0   :  { %v273_v39 = vsel %vm272_vm7, %v241_v35, %v271_v32 }
  0xf1   :  { %v248_v37 = vadd.f32 %v247_v33, %v246_v28 }
  0xf3   :  { %v275_v41 = vsel %vm274_vm8, %v248_v37, %v273_v39 }
  0xf4   :  { %v277_v44 = vsel %vm276_vm9, %v255_v38, %v275_v41 }
  0xf5   :  { %v279_v46 = vadd.f32 %v277_v44, %v198_v40 }
  0xf7   :  { %280 = vst.msk [vmem:[#allocation2] sm:$0xff] %vm41_vm1, %v279_v46 }
  0xfe   :  { %v289_v51 = vld [vmem:[#allocation2] sm:$0xff] }
  0xff   :  { %v298_v52 = vsub.f32 %v289_v51, %v296_v49 }
 0x101   :  { %v302_v53 = vmul.f32 %v464_v50, %v298_v52 }
 0x103   :  { %455 = vmatmul.mubr.msk.f32.vlgmr.msra.gmra.mxu1 %vm41_vm1, %v302_v53 }
 0x1c3   :  { %v383_v55 = vpop.f32.mrf.mxu1 }
 0x1c4   :  { %v384_v56 = vadd.f32 %v413_v54, %v383_v55 }
 0x1c5   :  { %v456_v57 = vpop.f32.mrf.mxu1 }
 0x1c6   :  { %388 = vst.msk [vmem:[#allocation8] sm:$0xff] %vm387_vm10, %v384_v56 }
 0x1c7   :  { %496 = shalt.err (!%p493_p9)
}
 0x1c8   :  { %398 = dma.vmem_to_hbm [thread:$0]  %s396_s25, 128, %s614_s6, [#allocation7]  }
 0x1c9   :  { %507 = dma.done.wait [#allocation7], 128  }
 0x1ca   :  { %508 = vsyncadd [#allocation7], 4294967168 }
 0x1cb   :  { %402 = vsyncpa [#allocation6], 1 }
 0x1cc   :  { %403 = vsyncpa [#allocation7], 1 }

</bundles_post_ra>
